<compile_context>
chip_gen: v6e
topology: v6e:2x2x1
jax: 0.10.0
libtpu: 0.0.40
codegen_flags: <defaults>
</compile_context>

<pallas_src>
import math
from functools import partial

import jax
import jax.numpy as jnp
from jax.experimental import pallas as pl
from jax.experimental.pallas import tpu as pltpu


def _round_up(x, m):
    return ((x + m - 1) // m) * m


def _vmem_limit_bytes(nbytes):
    # Size the scoped-VMEM request from the actual buffers, leave headroom, never ask
    # for the whole machine (v7x has only 64 MiB per TensorCore).
    return int(min(max(int(nbytes * 1.5) + (1 << 20), 4 << 20), 48 << 20))


def _pick_vocab_tile(V, want=512, lane=128, min_tiles=4):
    # Prefer a wide (>=256) lane-dense tile for the memory-bound LM head, but keep at
    # least `min_tiles` tiles so the "parallel" vocab axis load-balances across TCs.
    tv = max(lane, (min(want, _round_up(V, lane)) // lane) * lane)
    while tv > lane and _round_up(V, tv) // tv < min_tiles:
        tv = max(lane, (tv // 2) // lane * lane)
    return tv


# --------------------------------------------------------------------------------------
# Kernel 0 (once per sequence): K/V projection of the encoder features, row-tiled.
# --------------------------------------------------------------------------------------
def _kv_project_kernel(enc_ref, wkv_ref, k_ref, v_ref):
    Hp = k_ref.shape[-1]
    kv = jnp.dot(enc_ref[...], wkv_ref[...], preferred_element_type=jnp.float32)
    k_ref[...] = kv[:, :Hp].astype(jnp.bfloat16)       # 128-aligned slices, no relayout
    v_ref[...] = kv[:, Hp:].astype(jnp.bfloat16)


# --------------------------------------------------------------------------------------
# Kernel 1 (per decode step): embedding DMA-gather + attention + fused LSTMCell.
# --------------------------------------------------------------------------------------
def _attn_lstm_kernel(use_mxu_attention, batch,
                      tok_ref, emb_tab_ref, h_ref, c_ref, k_ref, v_ref,
                      wq_ref, wge_ref, wgh_ref, wgc_ref, bg_ref,
                      hnext_ref, cnext_ref, hnext_bf_ref,
                      emb_buf, emb_sem):
    Bp, NF, Hp = k_ref.shape

    # ---- DMA-gather embedding rows: ids from SMEM, table stays in HBM. The copies
    #      land while the attention chain below keeps the VPU/XLU/MXU busy. ----
    if batch < Bp:
        emb_buf[batch:, :] = jnp.zeros((Bp - batch, emb_buf.shape[1]), emb_buf.dtype)
    copies = [
        pltpu.make_async_copy(emb_tab_ref.at[pl.ds(tok_ref[b], 1), :],
                              emb_buf.at[pl.ds(b, 1), :],
                              emb_sem.at[b])
        for b in range(batch)
    ]
    for cp in copies:
        cp.start()

    h_f32 = h_ref[...]                                   # (Bp, Hp) f32
    h_bf = h_f32.astype(jnp.bfloat16)

    # ---- Early gates partial (MXU) so it overlaps the score/softmax/context chain ----
    gates = jnp.dot(h_bf, wgh_ref[...], preferred_element_type=jnp.float32) + bg_ref[...]

    # ---- Attention: q projection (1/sqrt(d) folded into wq at prepare time) ----
    q = jnp.dot(h_bf, wq_ref[...], preferred_element_type=jnp.float32)      # (Bp, Hp)

    if use_mxu_attention:
        scores = jnp.einsum("bqh,bnh->bqn", q.astype(jnp.bfloat16)[:, None, :], k_ref[...],
                            preferred_element_type=jnp.float32)[:, 0, :]    # (Bp, NF)
    else:
        # Small NF: VPU multiply + XLU reduce; frees the MXU for the gates partials.
        scores = jnp.sum(q[:, None, :] * k_ref[...].astype(jnp.float32), axis=-1)

    scores = scores - jnp.max(scores, axis=-1, keepdims=True)
    e = jnp.exp(scores)
    energy = e * pl.reciprocal(jnp.sum(e, axis=-1, keepdims=True), approx=True)  # softmax

    if use_mxu_attention:
        weighted = jnp.einsum("bqn,bnh->bqh", energy.astype(jnp.bfloat16)[:, None, :],
                              v_ref[...], preferred_element_type=jnp.float32)[:, 0, :]
    else:
        weighted = jnp.sum(energy[:, :, None] * v_ref[...].astype(jnp.float32), axis=1)

    # ---- Embedding rows have had the whole attention chain to land ----
    for cp in copies:
        cp.wait()
    emb = emb_buf[...]                                                      # (Bp, Ep) bf16

    gates = gates + jnp.dot(emb, wge_ref[...], preferred_element_type=jnp.float32)
    gates = gates + jnp.dot(weighted.astype(jnp.bfloat16), wgc_ref[...],
                            preferred_element_type=jnp.float32)

    # ---- LSTMCell gate math (f32), PyTorch i,f,g,o order, 128-aligned slices ----
    i_g = jax.nn.sigmoid(gates[:, 0 * Hp:1 * Hp])
    f_g = jax.nn.sigmoid(gates[:, 1 * Hp:2 * Hp])
    g_g = jnp.tanh(gates[:, 2 * Hp:3 * Hp])
    o_g = jax.nn.sigmoid(gates[:, 3 * Hp:4 * Hp])
    c_next = f_g * c_ref[...] + i_g * g_g
    h_next = o_g * jnp.tanh(c_next)

    hnext_ref[...] = h_next                              # aliased with h input
    cnext_ref[...] = c_next                              # aliased with c input
    hnext_bf_ref[...] = h_next.astype(jnp.bfloat16)      # bf16 copy for the LM head


# --------------------------------------------------------------------------------------
# Kernel 2 (per decode step): LM head, gridded over vocab column tiles.
# --------------------------------------------------------------------------------------
def _lm_head_kernel(h_ref, w_ref, b_ref, pred_ref):
    pred_ref[...] = (jnp.dot(h_ref[...], w_ref[...], preferred_element_type=jnp.float32)
                     + b_ref[...]).astype(pred_ref.dtype)


# --------------------------------------------------------------------------------------
# Parameter init (raw PyTorch-style layout) and one-time preparation (transpose / split /
# pad / bf16-cast / fold 1/sqrt(d)), so no per-step weight work remains in the call path.
# --------------------------------------------------------------------------------------
def init_params(key, embed_dim, hidden_dim, vocab_size):
    ks = jax.random.split(key, 10)
    s = 0.1
    return {
        "embedding": jax.random.normal(ks[0], (vocab_size, embed_dim), jnp.float32) * s,
        "wq": jax.random.normal(ks[1], (hidden_dim, hidden_dim), jnp.float32) * s,
        "wk": jax.random.normal(ks[2], (hidden_dim, hidden_dim), jnp.float32) * s,
        "wv": jax.random.normal(ks[3], (hidden_dim, hidden_dim), jnp.float32) * s,
        "w_ih": jax.random.normal(ks[4], (4 * hidden_dim, embed_dim + hidden_dim), jnp.float32) * s,
        "w_hh": jax.random.normal(ks[5], (4 * hidden_dim, hidden_dim), jnp.float32) * s,
        "b_ih": jax.random.normal(ks[6], (4 * hidden_dim,), jnp.float32) * s,
        "b_hh": jax.random.normal(ks[7], (4 * hidden_dim,), jnp.float32) * s,
        "w_lm": jax.random.normal(ks[8], (vocab_size, hidden_dim), jnp.float32) * s,
        "b_lm": jax.random.normal(ks[9], (vocab_size,), jnp.float32) * s,
    }


def prepare_params(params, embed_dim, hidden_dim, vocab_size, *, vocab_tile=512, lane=128):
    E, H, V = embed_dim, hidden_dim, vocab_size
    Ep, Hp = _round_up(E, lane), _round_up(H, lane)
    TV = _pick_vocab_tile(V, want=vocab_tile, lane=lane)
    Vp = _round_up(V, TV)

    def pad2(w, r, c):
        return jnp.pad(w, ((0, r - w.shape[0]), (0, c - w.shape[1])))

    # Embedding table: bf16, lane-padded columns; stays in HBM, rows DMA-gathered.
    emb_tab = pad2(params["embedding"], V, Ep).astype(jnp.bfloat16)              # (V, Ep)

    # Attention: pre-transposed wq with 1/sqrt(d) folded in; wk|wv fused to (Hp, 2Hp).
    inv_sqrt_d = 1.0 / math.sqrt(float(H))
    wq_t = pad2(params["wq"].T * inv_sqrt_d, Hp, Hp).astype(jnp.bfloat16)
    wkv_t = jnp.concatenate([pad2(params["wk"].T, Hp, Hp),
                             pad2(params["wv"].T, Hp, Hp)], axis=1).astype(jnp.bfloat16)

    # LSTM: split gate weight into three slabs (emb / ctx / h) so the concat disappears
    # and the h-partial matmul can overlap the attention chain. Gate columns [i|f|g|o],
    # each Hp wide (padding zero). Biases pre-summed.
    w_ih, w_hh = params["w_ih"], params["w_hh"]
    w_g_emb = jnp.zeros((Ep, 4 * Hp), jnp.float32)
    w_g_ctx = jnp.zeros((Hp, 4 * Hp), jnp.float32)
    w_g_h = jnp.zeros((Hp, 4 * Hp), jnp.float32)
    b_g = jnp.zeros((1, 4 * Hp), jnp.float32)
    for g in range(4):
        wg_ih = w_ih[g * H:(g + 1) * H, :]                                       # (H, E+H)
        wg_hh = w_hh[g * H:(g + 1) * H, :]                                       # (H, H)
        w_g_emb = w_g_emb.at[0:E, g * Hp:g * Hp + H].set(wg_ih[:, :E].T)
        w_g_ctx = w_g_ctx.at[0:H, g * Hp:g * Hp + H].set(wg_ih[:, E:].T)
        w_g_h = w_g_h.at[0:H, g * Hp:g * Hp + H].set(wg_hh.T)
        b_g = b_g.at[0, g * Hp:g * Hp + H].set(
            params["b_ih"][g * H:(g + 1) * H] + params["b_hh"][g * H:(g + 1) * H])

    # LM head: pre-transposed, padded, bf16.
    w_lm_t = pad2(params["w_lm"].T, Hp, Vp).astype(jnp.bfloat16)                 # (Hp, Vp)
    b_lm = jnp.pad(params["b_lm"], (0, Vp - V))[None, :].astype(jnp.float32)     # (1, Vp)

    return {
        "embedding": emb_tab,
        "wq_t": wq_t, "wkv_t": wkv_t,
        "w_g_emb": w_g_emb.astype(jnp.bfloat16),
        "w_g_ctx": w_g_ctx.astype(jnp.bfloat16),
        "w_g_h": w_g_h.astype(jnp.bfloat16),
        "b_g": b_g,
        "w_lm_t": w_lm_t, "b_lm": b_lm,
        "dims": (E, H, V, Ep, Hp, Vp, TV),
    }


# --------------------------------------------------------------------------------------
# Once-per-sequence: encoder K/V projection (hoisted out of the decode loop).
# --------------------------------------------------------------------------------------
def precompute_attention_kv(prepared, encoder_out):
    E, H, V, Ep, Hp, Vp, TV = prepared["dims"]
    B, NF, _ = encoder_out.shape
    Bp = _round_up(B, 8)

    # One-time glue: pad + bf16-cast + flatten (pre-flattened so the kernel never reshapes).
    enc = jnp.pad(encoder_out, ((0, Bp - B), (0, 0), (0, Hp - H))).astype(jnp.bfloat16)
    Rraw = Bp * NF
    TR = min(512, _round_up(Rraw, 8))
    R = _round_up(Rraw, TR)
    enc_flat = jnp.pad(enc.reshape(Rraw, Hp), ((0, R - Rraw), (0, 0)))

    per_step = 2 * (TR * Hp * 2) * 2 + Hp * 2 * Hp * 2 + 2 * (TR * Hp * 2) * 2 + TR * 2 * Hp * 4
    k_flat, v_flat = pl.pallas_call(
        _kv_project_kernel,
        out_shape=(jax.ShapeDtypeStruct((R, Hp), jnp.bfloat16),
                   jax.ShapeDtypeStruct((R, Hp), jnp.bfloat16)),
        grid=(R // TR,),
        in_specs=[pl.BlockSpec((TR, Hp), lambda r: (r, 0)),
                  pl.BlockSpec((Hp, 2 * Hp), lambda r: (0, 0))],
        out_specs=(pl.BlockSpec((TR, Hp), lambda r: (r, 0)),
                   pl.BlockSpec((TR, Hp), lambda r: (r, 0))),
        compiler_params=pltpu.CompilerParams(
            dimension_semantics=("parallel",),
            vmem_limit_bytes=_vmem_limit_bytes(per_step)),
        cost_estimate=pl.CostEstimate(
            flops=4 * R * Hp * Hp, transcendentals=0,
            bytes_accessed=R * Hp * 2 + Hp * 2 * Hp * 2 + 2 * R * Hp * 2),
    )(enc_flat, prepared["wkv_t"])

    k = k_flat[:Rraw].reshape(Bp, NF, Hp)
    v = v_flat[:Rraw].reshape(Bp, NF, Hp)
    return k, v


def pad_decoder_state(hidden_state, hidden_dim, *, lane=128):
    """Pad (B,1,H) h/c once; keep the state padded between decode steps."""
    h3, c3 = hidden_state
    B = h3.shape[0]
    Bp = _round_up(B, 8)
    Hp = _round_up(hidden_dim, lane)
    h = jnp.pad(h3[:, 0, :], ((0, Bp - B), (0, Hp - hidden_dim)))
    c = jnp.pad(c3[:, 0, :], ((0, Bp - B), (0, Hp - hidden_dim)))
    return h, c


# --------------------------------------------------------------------------------------
# Per decode step: attn + LSTM (state aliased in place), then tiled LM head.
# --------------------------------------------------------------------------------------
def decode_step(prepared, token_ids, h_pad, c_pad, k, v, *, logits_dtype=jnp.float32):
    E, H, V, Ep, Hp, Vp, TV = prepared["dims"]
    Bp, NF, _ = k.shape
    B = token_ids.shape[0]
    use_mxu_attention = NF >= 128   # small NF -> VPU/XLU path, large NF -> batched MXU

    vmem = pl.BlockSpec(memory_space=pltpu.MemorySpace.VMEM)
    smem = pl.BlockSpec(memory_space=pltpu.MemorySpace.SMEM)
    anyspace = pl.BlockSpec(memory_space=pl.ANY)

    k1_bytes = (2 * Bp * Hp * 4                 # h, c (f32)
                + 2 * Bp * NF * Hp * 2          # k, v (bf16)
                + Hp * Hp * 2                   # wq
                + Ep * 4 * Hp * 2               # w_g_emb
                + 2 * Hp * 4 * Hp * 2           # w_g_h, w_g_ctx
                + 4 * Hp * 4                    # bias
                + 2 * Bp * Hp * 4 + Bp * Hp * 2  # outputs
                + Bp * Ep * 2                   # embedding scratch
                + Bp * 4 * Hp * 4               # f32 gates intermediate
                + (0 if use_mxu_attention else 2 * Bp * NF * Hp * 4))
    k1_flops = (2 * Bp * Hp * Hp + 4 * Bp * NF * Hp
                + 2 * Bp * (Ep + 2 * Hp) * 4 * Hp + 12 * Bp * Hp)
    k1_trans = Bp * NF + 5 * Bp * Hp

    h_next, c_next, h_next_bf = pl.pallas_call(
        partial(_attn_lstm_kernel, use_mxu_attention, B),
        out_shape=(
            jax.ShapeDtypeStruct((Bp, Hp), jnp.float32),
            jax.ShapeDtypeStruct((Bp, Hp), jnp.float32),
            jax.ShapeDtypeStruct((Bp, Hp), jnp.bfloat16),
        ),
        in_specs=[smem, anyspace, vmem, vmem, vmem, vmem, vmem, vmem, vmem, vmem, vmem],
        out_specs=(vmem, vmem, vmem),
        scratch_shapes=[pltpu.VMEM((Bp, Ep), jnp.bfloat16),
                        pltpu.SemaphoreType.DMA((Bp,))],
        input_output_aliases={2: 0, 3: 1},      # h, c updated in place
        compiler_params=pltpu.CompilerParams(vmem_limit_bytes=_vmem_limit_bytes(k1_bytes)),
        cost_estimate=pl.CostEstimate(flops=k1_flops, transcendentals=k1_trans,
                                      bytes_accessed=k1_bytes),
    )(token_ids, prepared["embedding"], h_pad, c_pad, k, v,
      prepared["wq_t"], prepared["w_g_emb"], prepared["w_g_h"], prepared["w_g_ctx"],
      prepared["b_g"])

    # LM head: wide lane-dense vocab tiles; "parallel" shards tiles across TensorCores
    # (v7x) while the (Hp, Vp) weight streams through VMEM one tile at a time.
    out_isz = jnp.dtype(logits_dtype).itemsize
    k2_bytes = Bp * Hp * 2 + Hp * Vp * 2 + Vp * 4 + Bp * Vp * out_isz
    k2_vmem = _vmem_limit_bytes(2 * (Hp * TV * 2 + TV * 4 + Bp * TV * out_isz) + Bp * Hp * 2)
    pred = pl.pallas_call(
        _lm_head_kernel,
        out_shape=jax.ShapeDtypeStruct((Bp, Vp), logits_dtype),
        grid=(Vp // TV,),
        in_specs=[pl.BlockSpec((Bp, Hp), lambda j: (0, 0)),
                  pl.BlockSpec((Hp, TV), lambda j: (0, j)),
                  pl.BlockSpec((1, TV), lambda j: (0, j))],
        out_specs=pl.BlockSpec((Bp, TV), lambda j: (0, j)),
        compiler_params=pltpu.CompilerParams(dimension_semantics=("parallel",),
                                             vmem_limit_bytes=k2_vmem),
        cost_estimate=pl.CostEstimate(flops=2 * Bp * Hp * Vp, transcendentals=0,
                                      bytes_accessed=k2_bytes),
    )(h_next_bf, prepared["w_lm_t"], prepared["b_lm"])

    return pred, h_next, c_next


# --------------------------------------------------------------------------------------
# PyTorch-shaped forward wrapper (single step). For a decode loop, call
# precompute_attention_kv / pad_decoder_state once and decode_step per token.
# --------------------------------------------------------------------------------------
def image_decoder_forward(prepared, input_token, hidden_state, encoder_out,
                          *, logits_dtype=jnp.float32):
    E, H, V, Ep, Hp, Vp, TV = prepared["dims"]
    B = input_token.shape[0]

    k, v = precompute_attention_kv(prepared, encoder_out)       # once per sequence
    h_pad, c_pad = pad_decoder_state(hidden_state, H)           # once per sequence

    pred, h_pad, c_pad = decode_step(prepared, input_token[:, 0].astype(jnp.int32),
                                     h_pad, c_pad, k, v, logits_dtype=logits_dtype)

    # Strip padding, restore the PyTorch (B, 1, .) convention.
    pred = pred[:B, :V]
    h_out = h_pad[:B, :H]
    c_out = c_pad[:B, :H]
    return pred[:, None, :], (h_out[:, None, :], c_out[:, None, :])


# --------------------------------------------------------------------------------------
# Pure-JAX f32 reference (documents the interpretation of the broken PyTorch bits).
# --------------------------------------------------------------------------------------
def _reference_forward(p, input_token, hidden_state, encoder_out):
    H = p["wq"].shape[0]
    h = hidden_state[0][:, 0, :]
    c = hidden_state[1][:, 0, :]
    emb = p["embedding"][input_token[:, 0]]
    q = h @ p["wq"].T
    k = encoder_out @ p["wk"].T
    v = encoder_out @ p["wv"].T
    scores = jnp.einsum("bh,bnh->bn", q, k) / jnp.sqrt(float(H))
    en = jax.nn.softmax(scores, axis=-1)
    ctx = jnp.einsum("bn,bnh->bh", en, v)
    x = jnp.concatenate([emb, ctx], axis=-1)
    gates = x @ p["w_ih"].T + p["b_ih"] + h @ p["w_hh"].T + p["b_hh"]
    i = jax.nn.sigmoid(gates[:, 0 * H:1 * H])
    f = jax.nn.sigmoid(gates[:, 1 * H:2 * H])
    g = jnp.tanh(gates[:, 2 * H:3 * H])
    o = jax.nn.sigmoid(gates[:, 3 * H:4 * H])
    c2 = f * c + i * g
    h2 = o * jnp.tanh(c2)
    pred = h2 @ p["w_lm"].T + p["b_lm"]
    return pred[:, None, :], (h2[:, None, :], c2[:, None, :])


if __name__ == "__main__":
    B, E, H, V, NF = 2, 32, 32, 64, 8
    key = jax.random.PRNGKey(0)
    kp, kt, kh, kc, ke = jax.random.split(key, 5)

    raw_params = init_params(kp, E, H, V)
    prepared = prepare_params(raw_params, E, H, V)       # one-time weight prep

    input_token = jax.random.randint(kt, (B, 1), 0, V, dtype=jnp.int32)
    h0 = jax.random.normal(kh, (B, 1, H), jnp.float32)
    c0 = jax.random.normal(kc, (B, 1, H), jnp.float32)
    encoder_out = jax.random.normal(ke, (B, NF, H), jnp.float32)

    pred, (h1, c1) = image_decoder_forward(prepared, input_token, (h0, c0), encoder_out)
    jax.block_until_ready((pred, h1, c1))

    assert pred.shape == (B, 1, V)
    assert h1.shape == (B, 1, H) and c1.shape == (B, 1, H)
    assert bool(jnp.all(jnp.isfinite(pred)))
    assert bool(jnp.all(jnp.isfinite(h1))) and bool(jnp.all(jnp.isfinite(c1)))

    # Numerics vs. f32 reference (bf16 matmuls + approx softmax reciprocal -> loose tol).
    pred_r, (h1_r, c1_r) = _reference_forward(raw_params, input_token, (h0, c0), encoder_out)
    assert bool(jnp.allclose(pred, pred_r, atol=2e-2, rtol=2e-2))
    assert bool(jnp.allclose(h1, h1_r, atol=2e-2, rtol=2e-2))
    assert bool(jnp.allclose(c1, c1_r, atol=2e-2, rtol=2e-2))

    # Multi-step decode usage: K/V hoisted out of the loop, state kept padded & aliased.
    kk, vv = precompute_attention_kv(prepared, encoder_out)
    h_pad, c_pad = pad_decoder_state((h0, c0), H)
    tok = input_token[:, 0]
    for _ in range(2):
        logits, h_pad, c_pad = decode_step(prepared, tok, h_pad, c_pad, kk, vv)
        tok = jnp.argmax(logits[:B, :V], axis=-1).astype(jnp.int32)
    jax.block_until_ready((logits, h_pad, c_pad))
    assert bool(jnp.all(jnp.isfinite(logits[:B, :V])))

    print("KERNEL_OK")
</pallas_src>

<mosaic_0001>
module attributes {stable_mosaic.version = 11 : i64} {
  func.func @_kv_project_kernel(%arg0: i32, %arg1: memref<64x128xbf16, #tpu.memory_space<vmem>>, %arg2: memref<128x256xbf16, #tpu.memory_space<vmem>>, %arg3: memref<64x128xbf16, #tpu.memory_space<vmem>>, %arg4: memref<64x128xbf16, #tpu.memory_space<vmem>>) attributes {dimension_semantics = [#tpu.dimension_semantics<parallel>], iteration_bounds = array<i64: 1>, scalar_prefetch = 0 : i64, scratch_operands = 0 : i64, tpu.core_type = #tpu.core_type<tc>, window_params = [{transform_indices = @transform_0, window_bounds = array<i64: 64, 128>}, {pipeline_mode = #tpu.pipeline_mode<synchronous>, transform_indices = @transform_1, window_bounds = array<i64: 128, 256>}, {transform_indices = @transform_2, window_bounds = array<i64: 64, 128>}, {transform_indices = @transform_3, window_bounds = array<i64: 64, 128>}]} {
    %c0 = arith.constant 0 : index
    %c0_0 = arith.constant 0 : index
    %0 = vector.load %arg1[%c0, %c0_0] : memref<64x128xbf16, #tpu.memory_space<vmem>>, vector<64x128xbf16>
    %c0_1 = arith.constant 0 : index
    %c0_2 = arith.constant 0 : index
    %1 = vector.load %arg2[%c0_1, %c0_2] : memref<128x256xbf16, #tpu.memory_space<vmem>>, vector<128x256xbf16>
    %cst = arith.constant dense<0.000000e+00> : vector<64x256xf32>
    %2 = tpu.matmul %0, %1, %cst {dimension_numbers = #tpu.dot_dimension_numbers<[1], [0], [0], [1], [0, 0, 1, 1], [], []>} : vector<64x128xbf16>, vector<128x256xbf16>, vector<64x256xf32> -> vector<64x256xf32>
    %3 = vector.extract_strided_slice %2 {offsets = [0, 0], sizes = [64, 128], strides = [1, 1]} : vector<64x256xf32> to vector<64x128xf32>
    %4 = arith.truncf %3 : vector<64x128xf32> to vector<64x128xbf16>
    %c0_3 = arith.constant 0 : index
    %c0_4 = arith.constant 0 : index
    %5 = vector.load %arg3[%c0_3, %c0_4] : memref<64x128xbf16, #tpu.memory_space<vmem>>, vector<64x128xbf16>
    tpu.vector_store %arg3[%c0_3, %c0_4], %4 {strides = array<i32>} : memref<64x128xbf16, #tpu.memory_space<vmem>>, vector<64x128xbf16>,
    %6 = vector.extract_strided_slice %2 {offsets = [0, 128], sizes = [64, 128], strides = [1, 1]} : vector<64x256xf32> to vector<64x128xf32>
    %7 = arith.truncf %6 : vector<64x128xf32> to vector<64x128xbf16>
    %c0_5 = arith.constant 0 : index
    %c0_6 = arith.constant 0 : index
    %8 = vector.load %arg4[%c0_5, %c0_6] : memref<64x128xbf16, #tpu.memory_space<vmem>>, vector<64x128xbf16>
    tpu.vector_store %arg4[%c0_5, %c0_6], %7 {strides = array<i32>} : memref<64x128xbf16, #tpu.memory_space<vmem>>, vector<64x128xbf16>,
    return
  }
  func.func @transform_0(%arg0: i32) -> (i32, i32) {
    %c0_i32 = arith.constant 0 : i32
    %c0_i32_0 = arith.constant 0 : i32
    return %arg0, %c0_i32 : i32, i32
  }
  func.func @transform_1(%arg0: i32) -> (i32, i32) {
    %c0_i32 = arith.constant 0 : i32
    %c0_i32_0 = arith.constant 0 : i32
    %c0_i32_1 = arith.constant 0 : i32
    return %c0_i32, %c0_i32_0 : i32, i32
  }
  func.func @transform_2(%arg0: i32) -> (i32, i32) {
    %c0_i32 = arith.constant 0 : i32
    %c0_i32_0 = arith.constant 0 : i32
    return %arg0, %c0_i32 : i32, i32
  }
  func.func @transform_3(%arg0: i32) -> (i32, i32) {
    %c0_i32 = arith.constant 0 : i32
    %c0_i32_0 = arith.constant 0 : i32
    return %arg0, %c0_i32 : i32, i32
  }
}

</mosaic_0001>

<bundles_post_ra>
// kernel: tpu_custom_call.1
= control target key start
LH: loop header
LB: loop body
LE: loop exit
PB: predicated region body
PF: predicated region fallthrough
CT: control target
= control target key end

     0   :  { %9 = vsyncpa [#allocation3], 0  ;;  %s648_s0 = inlined_call_operand.hbm [shape: bf16[64,128], index: 0, kind: input, shape index: {}]   ;;  %s649_s1 = inlined_call_operand.hbm [shape: bf16[128,256], index: 1, kind: input, shape index: {}]   ;;  %s650_s2 = inlined_call_operand.hbm [shape: bf16[64,128], index: 2, kind: output, shape index: {0}]   ;;  %s651_s3 = inlined_call_operand.hbm [shape: bf16[64,128], index: 3, kind: output, shape index: {1}]  }
   0x1   :  { %10 = vsyncpa [#allocation6], 0 }
   0x2   :  { %11 = vsyncpa [#allocation4], 0 }
   0x3   :  { %12 = vsyncpa [#allocation9], 0  ;;  %s598_s12 = smov [#allocation2]  }
   0x4   :  { %s18_s13 = sshll.u32 %s598_s12, 4  ;;  %s19_s13 = int_to_ptr.vmem [resolvable:$true] %s18_s13 }
   0x5   :  { %s518_s14 = scalar_lea.vmem %s19_s13, 512  ;;  %p523_p1 = scmp.lt.s32.totalorder %s19_s13, %s19_s13 }
   0x6   :  { %p519_p0 = scmp.ne.s32.totalorder %s19_s13, %s518_s14  ;;  %p524_p2 = scmp.lt.s32.totalorder %s518_s14, %s518_s14 }
   0x8   :  { %p525_p3 = por %p524_p2, %p523_p1 }
   0xa   :  { %p526_p4 = pnand %p525_p3, %p519_p0 }
   0xc   :  { %529 = shalt.err (!%p526_p4)
}
   0xd   :  { %s599_s15 = smov 64   ;;  %s600_s16 = smov 4  }
   0xe   :  { %24 = dma.hbm_to_vmem [thread:$0]  %s648_s0, 512, %s19_s13, [#allocation3], %s599_s15, %s599_s15, %s600_s16  }
   0xf   :  { %s601_s19 = smov [#allocation5]  }
  0x10   :  { %s30_s20 = sshll.u32 %s601_s19, 4  ;;  %s31_s20 = int_to_ptr.vmem [resolvable:$true] %s30_s20 }
  0x11   :  { %s538_s21 = scalar_lea.vmem %s31_s20, 2048  ;;  %p543_p6 = scmp.lt.s32.totalorder %s31_s20, %s31_s20 }
  0x12   :  { %p539_p5 = scmp.ne.s32.totalorder %s31_s20, %s538_s21  ;;  %p544_p7 = scmp.lt.s32.totalorder %s538_s21, %s538_s21 }
  0x14   :  { %p545_p8 = por %p544_p7, %p543_p6 }
  0x16   :  { %p546_p9 = pnand %p545_p8, %p539_p5 }
  0x18   :  { %549 = shalt.err (!%p546_p9)
}
  0x19   :  { %s602_s22 = smov 128   ;;  %s603_s23 = smov 8  }
  0x1a   :  { %36 = dma.hbm_to_vmem [thread:$0]  %s649_s1, 2048, %s31_s20, [#allocation6], %s602_s22, %s602_s22, %s603_s23  }
  0x1b   :  { %590 = dma.done.wait [#allocation3], 512  }
  0x1c   :  { %591 = vsyncadd [#allocation3], 4294966784 }
  0x1d   :  { %592 = dma.done.wait [#allocation6], 2048  }
  0x1e   :  { %593 = vsyncadd [#allocation6], 4294965248  ;;  %v604_v0 = vmov 0   ;;  %v482_v1 = vld [vmem:[#allocation5 + $0x74] ss:$8 sps:$4 sm:$0xff]   ;;  %v506_v17 = vld [vmem:[#allocation2] sm:$0xff]  }
  0x1f   :  { %204 = vmatprep.mubr.bf16.mxu0 %v604_v0  ;;  %224 = vmatprep.mubr.bf16.mxu1 %v604_v0  ;;  %v484_v2 = vld [vmem:[#allocation5 + $0x70] ss:$8 sps:$4 sm:$0xff]   ;;  %v485_v3 = vld [vmem:[#allocation5 + $0x64] ss:$8 sps:$4 sm:$0xff]   ;;  %v487_v4 = vld [vmem:[#allocation5 + $0x60] ss:$8 sps:$4 sm:$0xff]  }
  0x20   :  { %172 = vmatprep.subr.bf16.mxu0 %v482_v1  ;;  %457 = vmatprep.subr.bf16.mxu1 %v482_v1  ;;  %v488_v5 = vld [vmem:[#allocation5 + $0x54] ss:$8 sps:$4 sm:$0xff]   ;;  %v490_v6 = vld [vmem:[#allocation5 + $0x50] ss:$8 sps:$4 sm:$0xff]   ;;  %v491_v7 = vld [vmem:[#allocation5 + $0x44] ss:$8 sps:$4 sm:$0xff]  }
  0x21   :  { %173 = vmatpush1.bf16.msra.mxu0 %v484_v2  ;;  %465 = vmatpush1.bf16.msra.mxu1 %v484_v2  ;;  %v493_v8 = vld [vmem:[#allocation5 + $0x40] ss:$8 sps:$4 sm:$0xff]   ;;  %v494_v9 = vld [vmem:[#allocation5 + $0x34] ss:$8 sps:$4 sm:$0xff]   ;;  %v496_v10 = vld [vmem:[#allocation5 + $0x30] ss:$8 sps:$4 sm:$0xff]  }
  0x22   :  { %174 = vmatprep.subr.bf16.mxu0 %v485_v3  ;;  %458 = vmatprep.subr.bf16.mxu1 %v485_v3  ;;  %v497_v11 = vld [vmem:[#allocation5 + $0x24] ss:$8 sps:$4 sm:$0xff]   ;;  %v499_v12 = vld [vmem:[#allocation5 + $0x20] ss:$8 sps:$4 sm:$0xff]   ;;  %v500_v13 = vld [vmem:[#allocation5 + $0x14] ss:$8 sps:$4 sm:$0xff]  }
  0x23   :  { %v502_v14 = vld [vmem:[#allocation5 + $0x10] ss:$8 sps:$4 sm:$0xff]   ;;  %v503_v15 = vld [vmem:[#allocation5 + $0x4] ss:$8 sps:$4 sm:$0xff]   ;;  %v505_v16 = vld [vmem:[#allocation5] ss:$8 sps:$4 sm:$0xff]  }
  0x24   :  { %v507_v18 = vld [vmem:[#allocation2 + $0x10] sm:$0xff]   ;;  %v508_v19 = vld [vmem:[#allocation2 + $0x8] sm:$0xff]   ;;  %v509_v20 = vld [vmem:[#allocation2 + $0x18] sm:$0xff]   ;;  %s605_s0 = smov [#allocation7]   ;;  %s606_s26 = smov [#allocation8]  }
  0x25   :  { %175 = vmatpush1.bf16.msra.mxu0 %v487_v4  ;;  %466 = vmatpush1.bf16.msra.mxu1 %v487_v4  ;;  %s330_s1 = sshll.u32 %s605_s0, 4  ;;  %s342_s27 = sshll.u32 %s606_s26, 4  ;;  %s331_s1 = int_to_ptr.vmem [resolvable:$true] %s330_s1  ;;  %s343_s27 = int_to_ptr.vmem [resolvable:$true] %s342_s27 }
  0x26   :  { %176 = vmatprep.subr.bf16.mxu0 %v488_v5  ;;  %459 = vmatprep.subr.bf16.mxu1 %v488_v5  ;;  %s550_s28 = scalar_lea.vmem %s331_s1, 512  ;;  %p555_p11 = scmp.lt.s32.totalorder %s331_s1, %s331_s1 }
  0x27   :  { %p551_p10 = scmp.ne.s32.totalorder %s331_s1, %s550_s28  ;;  %p556_p12 = scmp.lt.s32.totalorder %s550_s28, %s550_s28 }
  0x29   :  { %177 = vmatpush1.bf16.msra.mxu0 %v490_v6  ;;  %467 = vmatpush1.bf16.msra.mxu1 %v490_v6  ;;  %p557_p13 = por %p556_p12, %p555_p11 }
  0x2a   :  { %178 = vmatprep.subr.bf16.mxu0 %v491_v7  ;;  %460 = vmatprep.subr.bf16.mxu1 %v491_v7 }
  0x2b   :  { %p558_p0 = pnand %p557_p13, %p551_p10 }
  0x2d   :  { %179 = vmatpush1.bf16.msra.mxu0 %v493_v8  ;;  %468 = vmatpush1.bf16.msra.mxu1 %v493_v8 }
  0x2e   :  { %180 = vmatprep.subr.bf16.mxu0 %v494_v9  ;;  %461 = vmatprep.subr.bf16.mxu1 %v494_v9 }
  0x31   :  { %181 = vmatpush1.bf16.msra.mxu0 %v496_v10  ;;  %469 = vmatpush1.bf16.msra.mxu1 %v496_v10 }
  0x32   :  { %182 = vmatprep.subr.bf16.mxu0 %v497_v11  ;;  %462 = vmatprep.subr.bf16.mxu1 %v497_v11 }
  0x35   :  { %183 = vmatpush1.bf16.msra.mxu0 %v499_v12  ;;  %470 = vmatpush1.bf16.msra.mxu1 %v499_v12 }
  0x36   :  { %184 = vmatprep.subr.bf16.mxu0 %v500_v13  ;;  %463 = vmatprep.subr.bf16.mxu1 %v500_v13 }
  0x39   :  { %185 = vmatpush1.bf16.msra.mxu0 %v502_v14  ;;  %471 = vmatpush1.bf16.msra.mxu1 %v502_v14 }
  0x3a   :  { %186 = vmatprep.subr.bf16.mxu0 %v503_v15  ;;  %464 = vmatprep.subr.bf16.mxu1 %v503_v15 }
  0x3d   :  { %187 = vmatpush1.bf16.msra.mxu0 %v505_v16  ;;  %472 = vmatpush1.bf16.msra.mxu1 %v505_v16 }
  0x40   :  { %205 = vmatmul.mubr.bf16.vlgmr.msra.gmra.mxu0 %v506_v17  ;;  %225 = vmatmul.mubr.bf16.vlgmr.msra.gmra.mxu1 %v507_v18 }
  0x41   :  { %214 = vmatprep.mubr.bf16.mxu0 %v604_v0  ;;  %234 = vmatprep.mubr.bf16.mxu1 %v604_v0 }
  0x48   :  { %215 = vmatmul.mubr.bf16.gmra.mxu0 %v508_v19  ;;  %235 = vmatmul.mubr.bf16.gmra.mxu1 %v509_v20 }
 0x100   :  { %v206_v21 = vpop.f32.mrf.mxu0  ;;  %v226_v22 = vpop.f32.mrf.mxu1 }
 0x102   :  { %v208_v23 = vpop.f32.mrf.mxu0  ;;  %v228_v24 = vpop.f32.mrf.mxu1 }
 0x104   :  { %v210_v25 = vpop.f32.mrf.mxu0  ;;  %v230_v26 = vpop.f32.mrf.mxu1 }
 0x105   :  { %v414_v27 = vpack.c.bf16 %v210_v25, %v206_v21  ;;  %v424_v28 = vpack.c.bf16 %v230_v26, %v226_v22 }
 0x106   :  { %v212_v29 = vpop.f32.mrf.mxu0  ;;  %v232_v30 = vpop.f32.mrf.mxu1 }
 0x107   :  { %415 = vst [vmem:[#allocation7] sm:$0xff] %v414_v27   ;;  %452 = vst [vmem:[#allocation7 + $0x10] sm:$0xff] %v424_v28   ;;  %v434_v31 = vpack.c.bf16 %v212_v29, %v208_v23  ;;  %v444_v32 = vpack.c.bf16 %v232_v30, %v228_v24 }
 0x108   :  { %v216_v33 = vpop.f32.mrf.mxu0  ;;  %v236_v34 = vpop.f32.mrf.mxu1 }
 0x109   :  { %435 = vst [vmem:[#allocation8] sm:$0xff] %v434_v31   ;;  %455 = vst [vmem:[#allocation8 + $0x10] sm:$0xff] %v444_v32  }
 0x10a   :  { %v218_v35 = vpop.f32.mrf.mxu0  ;;  %v238_v36 = vpop.f32.mrf.mxu1 }
 0x10c   :  { %v220_v37 = vpop.f32.mrf.mxu0  ;;  %v240_v38 = vpop.f32.mrf.mxu1 }
 0x10d   :  { %v419_v39 = vpack.c.bf16 %v220_v37, %v216_v33  ;;  %v429_v40 = vpack.c.bf16 %v240_v38, %v236_v34 }
 0x10e   :  { %v222_v41 = vpop.f32.mrf.mxu0  ;;  %v242_v42 = vpop.f32.mrf.mxu1 }
 0x10f   :  { %451 = vst [vmem:[#allocation7 + $0x8] sm:$0xff] %v419_v39   ;;  %453 = vst [vmem:[#allocation7 + $0x18] sm:$0xff] %v429_v40   ;;  %v439_v43 = vpack.c.bf16 %v222_v41, %v218_v35  ;;  %v449_v44 = vpack.c.bf16 %v242_v42, %v238_v36 }
 0x110   :  { %561 = shalt.err (!%p558_p0)
}
 0x111   :  { %336 = dma.vmem_to_hbm [thread:$0]  %s331_s1, 512, %s650_s2, [#allocation4], %s599_s15, %s599_s15, %s600_s16   ;;  %454 = vst [vmem:[#allocation8 + $0x8] sm:$0xff] %v439_v43   ;;  %456 = vst [vmem:[#allocation8 + $0x18] sm:$0xff] %v449_v44  }
 0x112   :  { %s570_s4 = scalar_lea.vmem %s343_s27, 512  ;;  %p575_p2 = scmp.lt.s32.totalorder %s343_s27, %s343_s27 }
 0x113   :  { %p571_p1 = scmp.ne.s32.totalorder %s343_s27, %s570_s4  ;;  %p576_p3 = scmp.lt.s32.totalorder %s570_s4, %s570_s4 }
 0x115   :  { %p577_p4 = por %p576_p3, %p575_p2 }
 0x117   :  { %p578_p5 = pnand %p577_p4, %p571_p1 }
 0x119   :  { %581 = shalt.err (!%p578_p5)
}
 0x11a   :  { %348 = dma.vmem_to_hbm [thread:$0]  %s343_s27, 512, %s651_s3, [#allocation9], %s599_s15, %s599_s15, %s600_s16  }
 0x11b   :  { %594 = dma.done.wait [#allocation4], 512  }
 0x11c   :  { %595 = vsyncadd [#allocation4], 4294966784 }
 0x11d   :  { %596 = dma.done.wait [#allocation9], 512  }
 0x11e   :  { %597 = vsyncadd [#allocation9], 4294966784 }
 0x11f   :  { %355 = vsyncpa [#allocation3], 1 }
 0x120   :  { %356 = vsyncpa [#allocation6], 1 }
 0x121   :  { %357 = vsyncpa [#allocation4], 1 }
 0x122   :  { %358 = vsyncpa [#allocation9], 1 }

</bundles_post_ra>
